<compile_context>
chip_gen: v5e
topology: v5e:2x2
jax: 0.10.0
libtpu: 0.0.40
codegen_flags: <defaults>
</compile_context>

<pallas_src>
import functools

import jax
import jax.numpy as jnp
from jax.experimental import pallas as pl
from jax.experimental.pallas import tpu as pltpu


def _coupling_kernel(net_in_ref, x2_ref, logpx_ref,
                     w1_ref, b1_ref, w2_ref, b2_ref, w3_ref, b3_ref,
                     sfac_ref,
                     y1_ref, logpy_ref,
                     *, reverse, nonlinearity):
    f32 = jnp.float32

    net_in = net_in_ref[...].astype(f32)          # (TB, d1 + C)
    x2 = x2_ref[...].astype(f32)                  # (TB, d2)
    logpx = logpx_ref[...].astype(f32)            # (TB, 1)

    if nonlinearity == "ReLu":
        act = lambda v: jnp.maximum(v, 0.0)
    else:                                         # 'Tanh'
        act = jnp.tanh

    dot = functools.partial(jnp.dot, preferred_element_type=f32)

    # Conditioner MLP (net_s_t).
    h = act(dot(net_in, w1_ref[...].astype(f32)) + b1_ref[...].astype(f32))
    h = act(dot(h, w2_ref[...].astype(f32)) + b2_ref[...].astype(f32))
    st = dot(h, w3_ref[...].astype(f32)) + b3_ref[...].astype(f32)   # (TB, 2*d2)

    d2 = x2.shape[1]
    s = st[:, :d2]
    shift = st[:, d2:]

    # Bounded scale + log-det-jacobian (lane-axis reduction).
    s_fac = sfac_ref[...].astype(f32)             # (1, d2)
    scale = jnp.tanh(s / s_fac) * s_fac
    ldj = jnp.sum(scale, axis=1, keepdims=True)   # (TB, 1)

    if reverse:
        y1 = x2 * jnp.exp(scale) + shift
        logpy = logpx + ldj
    else:
        y1 = (x2 - shift) * jnp.exp(-scale)
        logpy = logpx - ldj

    y1_ref[...] = y1.astype(y1_ref.dtype)
    logpy_ref[...] = logpy.astype(logpy_ref.dtype)


def coupling_layer(x, context, params, *, logpx=None, reverse=False,
                   swap=False, nonlinearity="ReLu", block_b=256):
    """Pallas implementation of CouplingLayer.forward.

    x: (B, D) with D even; context: (B, C); logpx: (B,) or None.
    params: dict with w1 (d1+C, H), b1 (H,), w2 (H, H), b2 (H,),
            w3 (H, 2*d2), b3 (2*d2,), scaling_factor (d1,).
    """
    B, D = x.shape
    d1 = D - D // 2
    d2 = D - d1
    if d1 != d2:
        raise ValueError("CouplingLayer requires an even feature dim "
                         "(scaling_factor broadcast in the original module).")
    C = context.shape[1]
    H = params["w2"].shape[0]

    # --- glue kept in the wrapper (cheap XLA ops) ---------------------------
    if swap:
        x = jnp.concatenate([x[:, d1:], x[:, :d1]], axis=1)
    x1 = x[:, :d1]
    x2 = x[:, d1:]
    net_in = jnp.concatenate([x1, context], axis=1)      # (B, d1 + C)

    have_logpx = logpx is not None
    lp = (logpx.reshape(B, 1).astype(jnp.float32) if have_logpx
          else jnp.zeros((B, 1), jnp.float32))

    # --- batch tiling -------------------------------------------------------
    if B <= block_b:
        TB = B                                   # full-array block (always legal)
    else:
        TB = max(8, (block_b // 8) * 8)          # sublane-aligned tile
    pad = (-B) % TB
    if pad:
        net_in = jnp.pad(net_in, ((0, pad), (0, 0)))
        x2_in = jnp.pad(x2, ((0, pad), (0, 0)))
        lp_in = jnp.pad(lp, ((0, pad), (0, 0)))
    else:
        x2_in, lp_in = x2, lp
    Bp = B + pad
    grid = (Bp // TB,)

    w1 = params["w1"]
    b1 = params["b1"].reshape(1, H)
    w2 = params["w2"]
    b2 = params["b2"].reshape(1, H)
    w3 = params["w3"]
    b3 = params["b3"].reshape(1, 2 * d2)
    s_fac = jnp.exp(params["scaling_factor"]).reshape(1, d1).astype(jnp.float32)

    def tiled(cols):
        return pl.BlockSpec((TB, cols), lambda i: (i, 0))

    def resident(arr):                            # constant block index ->
        return pl.BlockSpec(arr.shape, lambda i: (0, 0))   # stays in VMEM

    kernel = functools.partial(_coupling_kernel,
                               reverse=bool(reverse),
                               nonlinearity=nonlinearity)

    grid_spec = pl.GridSpec(
        grid=grid,
        in_specs=[
            tiled(d1 + C),                # net_in
            tiled(d2),                    # x2
            tiled(1),                     # logpx
            resident(w1), resident(b1),
            resident(w2), resident(b2),
            resident(w3), resident(b3),
            resident(s_fac),
        ],
        out_specs=(
            tiled(d2),                    # y1
            tiled(1),                     # logpy (f32)
        ),
    )

    y1_p, logpy_p = pl.pallas_call(
        kernel,
        out_shape=(jax.ShapeDtypeStruct((Bp, d2), x.dtype),
                   jax.ShapeDtypeStruct((Bp, 1), jnp.float32)),
        grid_spec=grid_spec,
        compiler_params=pltpu.CompilerParams(
            dimension_semantics=("parallel",)),
    )(net_in, x2_in, lp_in, w1, b1, w2, b2, w3, b3, s_fac)

    y1 = y1_p[:B]
    y = (jnp.concatenate([x1, y1], axis=1) if not swap
         else jnp.concatenate([y1, x1], axis=1))
    if not have_logpx:
        return y
    logpy = logpy_p[:B, 0].astype(logpx.dtype).reshape(logpx.shape)
    return y, logpy


def _reference(x, context, params, *, logpx=None, reverse=False,
               swap=False, nonlinearity="ReLu"):
    """Pure-JAX mirror of the PyTorch module (f32-exact matmuls)."""
    hp = jax.lax.Precision.HIGHEST
    D = x.shape[1]
    d1 = D - D // 2
    d2 = D - d1
    if swap:
        x = jnp.concatenate([x[:, d1:], x[:, :d1]], axis=1)
    act = (lambda v: jnp.maximum(v, 0.0)) if nonlinearity == "ReLu" else jnp.tanh

    net_in = jnp.concatenate([x[:, :d1], context], axis=1)
    h = act(jnp.dot(net_in, params["w1"], precision=hp) + params["b1"])
    h = act(jnp.dot(h, params["w2"], precision=hp) + params["b2"])
    st = jnp.dot(h, params["w3"], precision=hp) + params["b3"]
    s, shift = st[:, :d2], st[:, d2:]

    s_fac = jnp.exp(params["scaling_factor"]).reshape(1, -1)
    scale = jnp.tanh(s / s_fac) * s_fac
    ldj = jnp.sum(scale, axis=1)
    if not reverse:
        y1 = (x[:, d1:] - shift) * jnp.exp(-scale)
        ldj = -ldj
    else:
        y1 = x[:, d1:] * jnp.exp(scale) + shift
    y = (jnp.concatenate([x[:, :d1], y1], axis=1) if not swap
         else jnp.concatenate([y1, x[:, :d1]], axis=1))
    if logpx is None:
        return y
    return y, logpx + ldj


if __name__ == "__main__":
    key = jax.random.PRNGKey(0)
    ks = jax.random.split(key, 8)

    # Small shapes consistent with the module's "2D experiments":
    # 2-D flow variable, module-default intermediate_dim=128, small context.
    B, D = 16, 2
    C, H = 128, 128
    d1 = D - D // 2
    d2 = D - d1

    x = jax.random.normal(ks[0], (B, D), jnp.float32)
    context = jax.random.normal(ks[1], (B, C), jnp.float32)
    logpx = jax.random.normal(ks[2], (B,), jnp.float32)

    def lin_init(k, fan_in, fan_out):
        kw, kb = jax.random.split(k)
        bound = 1.0 / (fan_in ** 0.5)
        w = jax.random.uniform(kw, (fan_in, fan_out), jnp.float32, -bound, bound)
        b = jax.random.uniform(kb, (fan_out,), jnp.float32, -bound, bound)
        return w, b

    w1, b1 = lin_init(ks[3], d1 + C, H)
    w2, b2 = lin_init(ks[4], H, H)
    w3, b3 = lin_init(ks[5], H, 2 * d2)
    params = dict(
        w1=w1, b1=b1, w2=w2, b2=b2, w3=w3, b3=b3,
        scaling_factor=0.1 * jax.random.normal(ks[6], (d1,), jnp.float32),
    )

    # Forward direction (reverse=False), no swap, ReLU — tiled grid (TB=8 -> 2 steps).
    y, lp = coupling_layer(x, context, params, logpx=logpx, reverse=False,
                           swap=False, nonlinearity="ReLu", block_b=8)
    jax.block_until_ready((y, lp))
    y_ref, lp_ref = _reference(x, context, params, logpx=logpx, reverse=False,
                               swap=False, nonlinearity="ReLu")
    assert jnp.allclose(y, y_ref, atol=2e-3, rtol=2e-3), "forward y mismatch"
    assert jnp.allclose(lp, lp_ref, atol=2e-3, rtol=2e-3), "forward logpx mismatch"

    # Reverse direction with swap=True and Tanh nonlinearity (other branches).
    yr, lpr = coupling_layer(x, context, params, logpx=logpx, reverse=True,
                             swap=True, nonlinearity="Tanh", block_b=8)
    jax.block_until_ready((yr, lpr))
    yr_ref, lpr_ref = _reference(x, context, params, logpx=logpx, reverse=True,
                                 swap=True, nonlinearity="Tanh")
    assert jnp.allclose(yr, yr_ref, atol=2e-3, rtol=2e-3), "reverse y mismatch"
    assert jnp.allclose(lpr, lpr_ref, atol=2e-3, rtol=2e-3), "reverse logpx mismatch"

    # logpx=None path (single full-array block).
    y_only = coupling_layer(x, context, params, logpx=None, reverse=False,
                            swap=False, nonlinearity="ReLu", block_b=256)
    jax.block_until_ready(y_only)
    y_only_ref = _reference(x, context, params, logpx=None, reverse=False,
                            swap=False, nonlinearity="ReLu")
    assert jnp.allclose(y_only, y_only_ref, atol=2e-3, rtol=2e-3), "y-only mismatch"

    print("KERNEL_OK")
</pallas_src>

<mosaic_0001>
module attributes {stable_mosaic.version = 11 : i64} {
  func.func @_coupling_kernel(%arg0: i32, %arg1: memref<8x129xf32, #tpu.memory_space<vmem>>, %arg2: memref<8x1xf32, #tpu.memory_space<vmem>>, %arg3: memref<8x1xf32, #tpu.memory_space<vmem>>, %arg4: memref<129x128xf32, #tpu.memory_space<vmem>>, %arg5: memref<1x128xf32, #tpu.memory_space<vmem>>, %arg6: memref<128x128xf32, #tpu.memory_space<vmem>>, %arg7: memref<1x128xf32, #tpu.memory_space<vmem>>, %arg8: memref<128x2xf32, #tpu.memory_space<vmem>>, %arg9: memref<1x2xf32, #tpu.memory_space<vmem>>, %arg10: memref<1x1xf32, #tpu.memory_space<vmem>>, %arg11: memref<8x1xf32, #tpu.memory_space<vmem>>, %arg12: memref<8x1xf32, #tpu.memory_space<vmem>>) attributes {dimension_semantics = [#tpu.dimension_semantics<parallel>], iteration_bounds = array<i64: 2>, scalar_prefetch = 0 : i64, scratch_operands = 0 : i64, tpu.core_type = #tpu.core_type<tc>, window_params = [{transform_indices = @transform_0, window_bounds = array<i64: 8, 129>}, {transform_indices = @transform_1, window_bounds = array<i64: 8, 1>}, {transform_indices = @transform_2, window_bounds = array<i64: 8, 1>}, {pipeline_mode = #tpu.pipeline_mode<synchronous>, transform_indices = @transform_3, window_bounds = array<i64: 129, 128>}, {pipeline_mode = #tpu.pipeline_mode<synchronous>, transform_indices = @transform_4, window_bounds = array<i64: 1, 128>}, {pipeline_mode = #tpu.pipeline_mode<synchronous>, transform_indices = @transform_5, window_bounds = array<i64: 128, 128>}, {pipeline_mode = #tpu.pipeline_mode<synchronous>, transform_indices = @transform_6, window_bounds = array<i64: 1, 128>}, {pipeline_mode = #tpu.pipeline_mode<synchronous>, transform_indices = @transform_7, window_bounds = array<i64: 128, 2>}, {pipeline_mode = #tpu.pipeline_mode<synchronous>, transform_indices = @transform_8, window_bounds = array<i64: 1, 2>}, {pipeline_mode = #tpu.pipeline_mode<synchronous>, transform_indices = @transform_9, window_bounds = array<i64: 1, 1>}, {transform_indices = @transform_10, window_bounds = array<i64: 8, 1>}, {transform_indices = @transform_11, window_bounds = array<i64: 8, 1>}]} {
    %c0 = arith.constant 0 : index
    %c0_0 = arith.constant 0 : index
    %0 = vector.load %arg1[%c0, %c0_0] : memref<8x129xf32, #tpu.memory_space<vmem>>, vector<8x129xf32>
    %c0_1 = arith.constant 0 : index
    %c0_2 = arith.constant 0 : index
    %1 = vector.load %arg2[%c0_1, %c0_2] : memref<8x1xf32, #tpu.memory_space<vmem>>, vector<8x1xf32>
    %c0_3 = arith.constant 0 : index
    %c0_4 = arith.constant 0 : index
    %2 = vector.load %arg3[%c0_3, %c0_4] : memref<8x1xf32, #tpu.memory_space<vmem>>, vector<8x1xf32>
    %c0_5 = arith.constant 0 : index
    %c0_6 = arith.constant 0 : index
    %3 = vector.load %arg4[%c0_5, %c0_6] : memref<129x128xf32, #tpu.memory_space<vmem>>, vector<129x128xf32>
    %cst = arith.constant dense<0.000000e+00> : vector<8x128xf32>
    %4 = tpu.matmul %0, %3, %cst {dimension_numbers = #tpu.dot_dimension_numbers<[1], [0], [0], [1], [0, 0, 1, 1], [], []>} : vector<8x129xf32>, vector<129x128xf32>, vector<8x128xf32> -> vector<8x128xf32>
    %c0_7 = arith.constant 0 : index
    %c0_8 = arith.constant 0 : index
    %5 = vector.load %arg5[%c0_7, %c0_8] : memref<1x128xf32, #tpu.memory_space<vmem>>, vector<1x128xf32>
    %6 = vector.broadcast %5 : vector<1x128xf32> to vector<8x128xf32>
    %7 = arith.addf %4, %6 : vector<8x128xf32>
    %cst_9 = arith.constant 0.000000e+00 : f32
    %8 = vector.broadcast %cst_9 : f32 to vector<8x128xf32>
    %9 = arith.maximumf %7, %8 : vector<8x128xf32>
    %c0_10 = arith.constant 0 : index
    %c0_11 = arith.constant 0 : index
    %10 = vector.load %arg6[%c0_10, %c0_11] : memref<128x128xf32, #tpu.memory_space<vmem>>, vector<128x128xf32>
    %cst_12 = arith.constant dense<0.000000e+00> : vector<8x128xf32>
    %11 = tpu.matmul %9, %10, %cst_12 {dimension_numbers = #tpu.dot_dimension_numbers<[1], [0], [0], [1], [0, 0, 1, 1], [], []>} : vector<8x128xf32>, vector<128x128xf32>, vector<8x128xf32> -> vector<8x128xf32>
    %c0_13 = arith.constant 0 : index
    %c0_14 = arith.constant 0 : index
    %12 = vector.load %arg7[%c0_13, %c0_14] : memref<1x128xf32, #tpu.memory_space<vmem>>, vector<1x128xf32>
    %13 = vector.broadcast %12 : vector<1x128xf32> to vector<8x128xf32>
    %14 = arith.addf %11, %13 : vector<8x128xf32>
    %cst_15 = arith.constant 0.000000e+00 : f32
    %15 = vector.broadcast %cst_15 : f32 to vector<8x128xf32>
    %16 = arith.maximumf %14, %15 : vector<8x128xf32>
    %c0_16 = arith.constant 0 : index
    %c0_17 = arith.constant 0 : index
    %17 = vector.load %arg8[%c0_16, %c0_17] : memref<128x2xf32, #tpu.memory_space<vmem>>, vector<128x2xf32>
    %cst_18 = arith.constant dense<0.000000e+00> : vector<8x2xf32>
    %18 = tpu.matmul %16, %17, %cst_18 {dimension_numbers = #tpu.dot_dimension_numbers<[1], [0], [0], [1], [0, 0, 1, 1], [], []>} : vector<8x128xf32>, vector<128x2xf32>, vector<8x2xf32> -> vector<8x2xf32>
    %c0_19 = arith.constant 0 : index
    %c0_20 = arith.constant 0 : index
    %19 = vector.load %arg9[%c0_19, %c0_20] : memref<1x2xf32, #tpu.memory_space<vmem>>, vector<1x2xf32>
    %20 = vector.broadcast %19 : vector<1x2xf32> to vector<8x2xf32>
    %21 = arith.addf %18, %20 : vector<8x2xf32>
    %22 = vector.extract_strided_slice %21 {offsets = [0, 0], sizes = [8, 1], strides = [1, 1]} : vector<8x2xf32> to vector<8x1xf32>
    %23 = vector.extract_strided_slice %21 {offsets = [0, 1], sizes = [8, 1], strides = [1, 1]} : vector<8x2xf32> to vector<8x1xf32>
    %c0_21 = arith.constant 0 : index
    %c0_22 = arith.constant 0 : index
    %24 = vector.load %arg10[%c0_21, %c0_22] : memref<1x1xf32, #tpu.memory_space<vmem>>, vector<1x1xf32>
    %25 = vector.broadcast %24 : vector<1x1xf32> to vector<8x1xf32>
    %26 = arith.divf %22, %25 : vector<8x1xf32>
    %27 = math.tanh %26 : vector<8x1xf32>
    %28 = vector.broadcast %24 : vector<1x1xf32> to vector<8x1xf32>
    %29 = arith.mulf %27, %28 : vector<8x1xf32>
    %cst_23 = arith.constant dense<0.000000e+00> : vector<8xf32>
    %30 = vector.multi_reduction <add>, %29, %cst_23 [1] : vector<8x1xf32> to vector<8xf32>
    %31 = vector.shape_cast %30 : vector<8xf32> to vector<8x1xf32>
    %32 = arith.subf %1, %23 : vector<8x1xf32>
    %cst_24 = arith.constant 0.000000e+00 : f32
    %33 = vector.broadcast %cst_24 : f32 to vector<8x1xf32>
    %34 = arith.subf %33, %29 : vector<8x1xf32>
    %35 = math.exp %34 : vector<8x1xf32>
    %36 = arith.mulf %32, %35 : vector<8x1xf32>
    %37 = arith.subf %2, %31 : vector<8x1xf32>
    %c0_25 = arith.constant 0 : index
    %c0_26 = arith.constant 0 : index
    %38 = vector.load %arg11[%c0_25, %c0_26] : memref<8x1xf32, #tpu.memory_space<vmem>>, vector<8x1xf32>
    tpu.vector_store %arg11[%c0_25, %c0_26], %36 {strides = array<i32>} : memref<8x1xf32, #tpu.memory_space<vmem>>, vector<8x1xf32>,
    %c0_27 = arith.constant 0 : index
    %c0_28 = arith.constant 0 : index
    %39 = vector.load %arg12[%c0_27, %c0_28] : memref<8x1xf32, #tpu.memory_space<vmem>>, vector<8x1xf32>
    tpu.vector_store %arg12[%c0_27, %c0_28], %37 {strides = array<i32>} : memref<8x1xf32, #tpu.memory_space<vmem>>, vector<8x1xf32>,
    return
  }
  func.func @transform_0(%arg0: i32) -> (i32, i32) {
    %c0_i32 = arith.constant 0 : i32
    %c0_i32_0 = arith.constant 0 : i32
    return %arg0, %c0_i32 : i32, i32
  }
  func.func @transform_1(%arg0: i32) -> (i32, i32) {
    %c0_i32 = arith.constant 0 : i32
    %c0_i32_0 = arith.constant 0 : i32
    return %arg0, %c0_i32 : i32, i32
  }
  func.func @transform_2(%arg0: i32) -> (i32, i32) {
    %c0_i32 = arith.constant 0 : i32
    %c0_i32_0 = arith.constant 0 : i32
    return %arg0, %c0_i32 : i32, i32
  }
  func.func @transform_3(%arg0: i32) -> (i32, i32) {
    %c0_i32 = arith.constant 0 : i32
    %c0_i32_0 = arith.constant 0 : i32
    %c0_i32_1 = arith.constant 0 : i32
    return %c0_i32, %c0_i32_0 : i32, i32
  }
  func.func @transform_4(%arg0: i32) -> (i32, i32) {
    %c0_i32 = arith.constant 0 : i32
    %c0_i32_0 = arith.constant 0 : i32
    %c0_i32_1 = arith.constant 0 : i32
    return %c0_i32, %c0_i32_0 : i32, i32
  }
  func.func @transform_5(%arg0: i32) -> (i32, i32) {
    %c0_i32 = arith.constant 0 : i32
    %c0_i32_0 = arith.constant 0 : i32
    %c0_i32_1 = arith.constant 0 : i32
    return %c0_i32, %c0_i32_0 : i32, i32
  }
  func.func @transform_6(%arg0: i32) -> (i32, i32) {
    %c0_i32 = arith.constant 0 : i32
    %c0_i32_0 = arith.constant 0 : i32
    %c0_i32_1 = arith.constant 0 : i32
    return %c0_i32, %c0_i32_0 : i32, i32
  }
  func.func @transform_7(%arg0: i32) -> (i32, i32) {
    %c0_i32 = arith.constant 0 : i32
    %c0_i32_0 = arith.constant 0 : i32
    %c0_i32_1 = arith.constant 0 : i32
    return %c0_i32, %c0_i32_0 : i32, i32
  }
  func.func @transform_8(%arg0: i32) -> (i32, i32) {
    %c0_i32 = arith.constant 0 : i32
    %c0_i32_0 = arith.constant 0 : i32
    %c0_i32_1 = arith.constant 0 : i32
    return %c0_i32, %c0_i32_0 : i32, i32
  }
  func.func @transform_9(%arg0: i32) -> (i32, i32) {
    %c0_i32 = arith.constant 0 : i32
    %c0_i32_0 = arith.constant 0 : i32
    %c0_i32_1 = arith.constant 0 : i32
    return %c0_i32, %c0_i32_0 : i32, i32
  }
  func.func @transform_10(%arg0: i32) -> (i32, i32) {
    %c0_i32 = arith.constant 0 : i32
    %c0_i32_0 = arith.constant 0 : i32
    return %arg0, %c0_i32 : i32, i32
  }
  func.func @transform_11(%arg0: i32) -> (i32, i32) {
    %c0_i32 = arith.constant 0 : i32
    %c0_i32_0 = arith.constant 0 : i32
    return %arg0, %c0_i32 : i32, i32
  }
}

</mosaic_0001>

<bundles_post_ra>
// kernel: tpu_custom_call.1
= control target key start
LH: loop header
LB: loop body
LE: loop exit
PB: predicated region body
PF: predicated region fallthrough
CT: control target
= control target key end

     0   :  { %s1267_s0 = inlined_call_operand.hbm [shape: f32[16,129], index: 0, kind: input, shape index: {}]   ;;  %s1268_s1 = inlined_call_operand.vmem [shape: f32[16,1], index: 1, kind: input, shape index: {}]   ;;  %s1269_s2 = inlined_call_operand.vmem [shape: f32[16,1], index: 2, kind: input, shape index: {}]   ;;  %s1270_s3 = inlined_call_operand.vmem [shape: f32[129,128], index: 3, kind: input, shape index: {}]   ;;  %s1271_s4 = inlined_call_operand.vmem [shape: f32[1,128], index: 4, kind: input, shape index: {}]   ;;  %s1272_s5 = inlined_call_operand.hbm [shape: f32[128,128], index: 5, kind: input, shape index: {}]   ;;  %s1273_s6 = inlined_call_operand.vmem [shape: f32[1,128], index: 6, kind: input, shape index: {}]   ;;  %s1274_s7 = inlined_call_operand.vmem [shape: f32[128,2], index: 7, kind: input, shape index: {}]   ;;  %s1275_s8 = inlined_call_operand.vmem [shape: f32[1,2], index: 8, kind: input, shape index: {}]   ;;  %s1276_s9 = inlined_call_operand.<no memory space> [shape: f32[1,1], index: 9, kind: input, shape index: {}]   ;;  %s1277_s10 = inlined_call_operand.vmem [shape: f32[16,1], index: 10, kind: output, shape index: {0}]   ;;  %s1278_s11 = inlined_call_operand.vmem [shape: f32[16,1], index: 11, kind: output, shape index: {1}]  }
   0x1   :  { %1279 = sst [smem:[#allocation9_spill]] %s1272_s5  ;;  %v17_v0 = vstv %s1276_s9 }
   0x2   :  { %18 = vst [vmem:[#allocation2] sm:$0x1] %v17_v0 }
   0x3   :  { %19 = vsyncpa [#allocation4], 0 }
   0x4   :  { %21 = vsyncpa [#allocation4 + $0x1], 0 }
   0x5   :  { %22 = vsyncpa [#allocation6], 0  ;;  %s1037_s19 = smov 0   ;;  %s1039_s20 = smov 0  }
   0x6   :  { %s1041_s21 = smov 0   ;;  %s1043_s22 = smov 0  }
   0x7 LB: > { %s1280_s5 = sld [smem:[#allocation9_spill]]  ;;  %s1059_s25 = sadd.s32 4294967295, %s968_s22   ;;  %s968_s22 = sphi %s1043_s22, %s1287_s22   ;;  %s964_s21 = sphi %s1041_s21, %s1286_s21   ;;  %s960_s20 = sphi %s1039_s20, %s1285_s20   ;;  %s956_s19 = sphi %s1037_s19, %s1284_s19  }
   0x8   : > { %p789_p0 = scmp.ge.s32.totalorder %s968_s22, 1  ;;  %p49_p1 = scmp.eq.s32.totalorder %s1059_s25, 0 }
   0x9   : > { %p310_p2 = scmp.lt.s32.totalorder %s968_s22, 3  ;;  %s970_s27 = smov [#allocation5]  }
   0xa   : > { %s329_s28 = sshll.u32 %s970_s27, 4  ;;  %s971_s29 = smov 128   ;;  %s330_s28 = int_to_ptr.vmem [resolvable:$true] %s329_s28 }
   0xb   : > { %p1064_p3 = pnand %p789_p0, %p310_p2  ;;  %s972_s30 = smov 8  }
   0xc   : > { %s1073_s12 = sadd.s32 1, %s968_s22   ;;  %s35_s14 = sadd.s32 1, %s964_s21 }
   0xd   : > { %s327_s24 = sshll.u32 %s1280_s5, 4  ;;  %p813_p4 = pneg %p1064_p3  ;;  %s328_s24 = int_to_ptr.hbm [resolvable:$true] %s327_s24 }
   0xe   : > { %s32_s13 = ssub.s32 %s968_s22, %s1073_s12  ;;  %p42_p7 = scmp.ne.s32.totalorder %s964_s21, %s960_s20 }
   0xf   : > { %p814_p5 = pnand %p813_p4, %p49_p1  ;;  %p33_p6 = scmp.eq.s32.totalorder %s32_s13, 0 }
  0x10   : > { %p43_p8 = scmp.eq.s32.totalorder %s968_s22, 0  ;;  %p48_p9 = scmp.ne.s32.totalorder %s960_s20, %s956_s19 }
  0x11   : > { %816 = dma.hbm_to_vmem [thread:$0]  (!%p814_p5), %s328_s24, 2048, %s330_s28, [#allocation6], %s971_s29, %s971_s29, %s972_s30  }
  0x12   : > { %s1083_s15 = scalar_select %p33_p6, %s964_s21, %s35_s14  }
  0x13   : > { %p44_p10 = por %p43_p8, %p42_p7  ;;  %p1087_p11 = por %p49_p1, %p48_p9 }
  0x14   : > { %p822_p12 = scmp.lt.s32.totalorder %s968_s22, 2  ;;  %s355_s17 = sand.u32 1, %s964_s21  }
  0x15   : > { %s792_s18 = sshll.u32 %s355_s17, 4  ;;  %s806_s9 = sshll.u32 %s968_s22, 4 }
  0x16   : > { %s364_s27 = scalar_lea.hbm %s1267_s0, %s806_s9  ;;  %s359_s28 = scalar_lea.vmem [#allocation3], %s792_s18 }
  0x17   : > { %s368_s29 = sshll.u32 %s359_s28, 4  ;;  %s366_s30 = sshll.u32 %s364_s27, 4  ;;  %s369_s29 = int_to_ptr.vmem [resolvable:$true] %s368_s29  ;;  %s367_s30 = int_to_ptr.hbm [resolvable:$true] %s366_s30 }
  0x18   : > { %p1097_p13 = pnand %p822_p12, %p44_p10  ;;  %s356_s13 = scalar_lea.sflag [#allocation4], %s355_s17 }
  0x19   : > { %s900_s14 = sshra.s32 %s367_s30, 4  ;;  %s907_s9 = scalar_lea.hbm %s1267_s0, 32  ;;  %s901_s14 = int_to_ptr.hbm [resolvable:$true] %s900_s14 }
  0x1a   : > { %s902_s5 = scalar_lea.hbm %s901_s14, 16  ;;  %p904_p2 = pneg %p1097_p13 }
  0x1b   : > { %p903_p0 = scmp.ne.s32.totalorder %s901_s14, %s902_s5  ;;  %p908_p6 = scmp.lt.s32.totalorder %s901_s14, %s1267_s0 }
  0x1c   : > { %p909_p7 = scmp.lt.s32.totalorder %s907_s9, %s902_s5 }
  0x1d   : > { %p905_p4 = pnand %p904_p2, %p903_p0 }
  0x1e   : > { %p910_p8 = por %p909_p7, %p908_p6 }
  0x1f   : > { %p906_p5 = pneg %p905_p4 }
  0x21   : > { %p911_p9 = pnand %p910_p8, %p906_p5 }
  0x23   : > { %914 = shalt.err (!%p911_p9)
}
  0x24   : > { %820 = dma.hbm_to_vmem [thread:$0]  (!%p1097_p13), %s367_s30, 256, %s369_s29, %s356_s13  }
  0x25   : > { %391 = sbr.rel (%p1064_p3) target bundleno = 599 (0x257), region = 60  ;;  %s393_s17 = sand.u32 (!%p1064_p3), 1, %s960_s20  }
  0x26   : > { %s1114_s27 = sshll.u32 (!%p1064_p3), %s393_s17, 4  ;;  %s394_s28 = scalar_lea.sflag (!%p1064_p3), [#allocation4], %s393_s17 }
  0x27   : > { %s397_s22 = scalar_lea.vmem (!%p1064_p3), [#allocation3], %s1114_s27 }
  0x2a   : > { %947 = dma.done.wait (%p1087_p11), %s394_s28, 256  }
  0x2b   : > { %949 = vsyncadd (%p1087_p11), %s394_s28, 4294967040 }
  0x2c   : > { %951 = dma.done.wait (%p49_p1), [#allocation6], 2048  }
  0x2d   : > { %953 = vsyncadd (%p49_p1), [#allocation6], 4294965248  ;;  %v488_v1 = vld [vmem:[%s1270_s3 + $0x78] sm:$0xff]  ;;  %v487_v2 = vld [vmem:[%s1270_s3 + $0x70] sm:$0xff]  ;;  %vm498_vm0 = vcmask 1040384   ;;  %vm494_vm1 = vcmask 7168  }
  0x2e   : > { %502 = vmatpush.msra.mxu0 %v488_v1  ;;  %v486_v3 = vld [vmem:[%s1270_s3 + $0x68] sm:$0xff]  ;;  %v485_v4 = vld [vmem:[%s1270_s3 + $0x60] sm:$0xff]  ;;  %v484_v6 = vld [vmem:[%s1270_s3 + $0x58] sm:$0xff]  ;;  %p453_p1 = scmp.lt.s32.totalorder %s1059_s25, 1  ;;  %s973_s23 = smov 127  }
  0x2f   : > { %v489_v5 = vld [vmem:[%s1270_s3 + $0x80] sm:$0x1]  ;;  %v557_v9 = vld [vmem:[#allocation5 + $0x70] sm:$0xff]  ;;  %v556_v11 = vld [vmem:[#allocation5 + $0x68] sm:$0xff] }
  0x30   : > { %503 = vmatpush.msra.mxu0 %v487_v2  ;;  %802 = vmatpush.msk.msra.mxu1 %vm498_vm0, %v489_v5  ;;  %v470_v7 = vld [vmem:[%s397_s22 + $0x8] sm:$0xff]  ;;  %v555_v13 = vld [vmem:[#allocation5 + $0x60] sm:$0xff]  ;;  %v553_v17 = vld [vmem:[#allocation5 + $0x50] sm:$0xff]  ;;  %s1289_s25 = smov (!%p453_p1, %s1059_s25), 1 }
  0x31   : > { %v558_v8 = vld [vmem:[#allocation5 + $0x78] sm:$0xff]  ;;  %803 = vmatmul.msk.f32.vlgmr.msra.gmra.mxu1 %vm494_vm1, %v470_v7  ;;  %v483_v10 = vld [vmem:[%s1270_s3 + $0x50] sm:$0xff]  ;;  %v482_v12 = vld [vmem:[%s1270_s3 + $0x48] sm:$0xff]  ;;  %s798_s24 = sshll.u32 %s1289_s25, 3 }
  0x32   : > { %504 = vmatpush.msra.mxu0 %v486_v3  ;;  %563 = vmatpush.msra.mxu2 %v558_v8  ;;  %v481_v14 = vld [vmem:[%s1270_s3 + $0x40] sm:$0xff]  ;;  %v480_v16 = vld [vmem:[%s1270_s3 + $0x38] sm:$0xff]  ;;  %v479_v18 = vld [vmem:[%s1270_s3 + $0x30] sm:$0xff]  ;;  %s460_s5 = scalar_lea.vmem %s1269_s2, %s798_s24  ;;  %s468_s30 = scalar_lea.vmem %s1278_s11, %s798_s24 }
  0x33   : > { %v554_v15 = vld [vmem:[#allocation5 + $0x58] sm:$0xff]  ;;  %v552_v19 = vld [vmem:[#allocation5 + $0x48] sm:$0xff]  ;;  %v551_v21 = vld [vmem:[#allocation5 + $0x40] sm:$0xff]  ;;  %s456_s25 = scalar_lea.vmem %s1268_s1, %s798_s24  ;;  %s464_s18 = scalar_lea.vmem %s1277_s10, %s798_s24 }
  0x34   : > { %505 = vmatpush.msra.mxu0 %v485_v4  ;;  %564 = vmatpush.msra.mxu2 %v557_v9  ;;  %v478_v20 = vld [vmem:[%s1270_s3 + $0x28] sm:$0xff]  ;;  %v477_v22 = vld [vmem:[%s1270_s3 + $0x20] sm:$0xff]  ;;  %v476_v24 = vld [vmem:[%s1270_s3 + $0x18] sm:$0xff] }
  0x35   : > { %v550_v23 = vld [vmem:[#allocation5 + $0x38] sm:$0xff]  ;;  %v549_v25 = vld [vmem:[#allocation5 + $0x30] sm:$0xff]  ;;  %v548_v27 = vld [vmem:[#allocation5 + $0x28] sm:$0xff] }
  0x36   : > { %506 = vmatpush.msra.mxu0 %v484_v6  ;;  %565 = vmatpush.msra.mxu2 %v556_v11  ;;  %v475_v26 = vld [vmem:[%s1270_s3 + $0x10] sm:$0xff]  ;;  %v474_v28 = vld [vmem:[%s1270_s3 + $0x8] sm:$0xff]  ;;  %v473_v30 = vld [vmem:[%s1270_s3] sm:$0xff] }
  0x37   : > { %v547_v29 = vld [vmem:[#allocation5 + $0x20] sm:$0xff]  ;;  %v546_v32 = vld [vmem:[#allocation5 + $0x18] sm:$0xff]  ;;  %v545_v33 = vld [vmem:[#allocation5 + $0x10] sm:$0xff] }
  0x38   : > { %507 = vmatpush.msra.mxu0 %v483_v10  ;;  %566 = vmatpush.msra.mxu2 %v555_v13  ;;  %v469_v31 = vld [vmem:[%s397_s22] sm:$0xff]  ;;  %v544_v34 = vld [vmem:[#allocation5 + $0x8] sm:$0xff]  ;;  %v860_v48 = vld [vmem:[%s1271_s4] ss:$0 sm:$0xff] }
  0x39   : > { %v543_v35 = vld [vmem:[#allocation5] sm:$0xff]  ;;  %v599_v36 = vld [vmem:[%s1274_s7 + $0x78] sm:$0xff]  ;;  %v598_v37 = vld [vmem:[%s1274_s7 + $0x70] sm:$0xff] }
  0x3a   : > { %508 = vmatpush.msra.mxu0 %v482_v12  ;;  %567 = vmatpush.msra.mxu2 %v554_v15  ;;  %v597_v38 = vld [vmem:[%s1274_s7 + $0x68] sm:$0xff]  ;;  %v596_v39 = vld [vmem:[%s1274_s7 + $0x60] sm:$0xff]  ;;  %v595_v40 = vld [vmem:[%s1274_s7 + $0x58] sm:$0xff] }
  0x3b   : > { %604 = vmatpush.msra.mxu3 %v599_v36  ;;  %v594_v41 = vld [vmem:[%s1274_s7 + $0x50] sm:$0xff]  ;;  %v593_v42 = vld [vmem:[%s1274_s7 + $0x48] sm:$0xff]  ;;  %v592_v43 = vld [vmem:[%s1274_s7 + $0x40] sm:$0xff] }
  0x3c   : > { %509 = vmatpush.msra.mxu0 %v481_v14  ;;  %568 = vmatpush.msra.mxu2 %v553_v17  ;;  %v591_v44 = vld [vmem:[%s1274_s7 + $0x38] sm:$0xff]  ;;  %v590_v45 = vld [vmem:[%s1274_s7 + $0x30] sm:$0xff]  ;;  %v589_v46 = vld [vmem:[%s1274_s7 + $0x28] sm:$0xff] }
  0x3d   : > { %605 = vmatpush.msra.mxu3 %v598_v37  ;;  %v588_v47 = vld [vmem:[%s1274_s7 + $0x20] sm:$0xff]  ;;  %v587_v49 = vld [vmem:[%s1274_s7 + $0x18] sm:$0xff]  ;;  %v586_v55 = vld [vmem:[%s1274_s7 + $0x10] sm:$0xff] }
  0x3e   : > { %510 = vmatpush.msra.mxu0 %v480_v16  ;;  %569 = vmatpush.msra.mxu2 %v552_v19  ;;  %v585_v56 = vld [vmem:[%s1274_s7 + $0x8] sm:$0xff]  ;;  %v584_v57 = vld [vmem:[%s1274_s7] sm:$0xff] }
  0x3f   : > { %606 = vmatpush.msra.mxu3 %v597_v38  ;;  %v861_v58 = vld [vmem:[%s1273_s6] ss:$0 sm:$0xff] }
  0x40   : > { %511 = vmatpush.msra.mxu0 %v479_v18  ;;  %570 = vmatpush.msra.mxu2 %v551_v21  ;;  %v863_v62 = vld [vmem:[#allocation2] ss:$0 sm:$0xff] }
  0x41   : > { %607 = vmatpush.msra.mxu3 %v596_v39  ;;  %864 = vrcp.f32 %v863_v62  ;;  %vm633_vm2 = vweird.f32 %v863_v62  ;;  %v639_v3 = vand.u32 2147483648, %v863_v62  ;;  %v637_v5 = vand.u32 2147483647, %v863_v62  ;;  %v862_v7 = vld [vmem:[%s1275_s8] ss:$0 sm:$0xff] }
  0x42   : > { %512 = vmatpush.msra.mxu0 %v478_v20  ;;  %571 = vmatpush.msra.mxu2 %v550_v23  ;;  %v472_v14 = vld [vmem:[%s460_s5] sm:$0xff] }
  0x43   : > { %608 = vmatpush.msra.mxu3 %v595_v40  ;;  %v640_v6 = vor.u32 1.1754944e-38, %v639_v3  ;;  %vm638_vm5 = vcmp.eq.f32.partialorder %v637_v5, 8.507059e+37  ;;  %v471_v19 = vld [vmem:[%s456_s25] sm:$0xff] }
  0x44   : > { %513 = vmatpush.msra.mxu0 %v477_v22  ;;  %572 = vmatpush.msra.mxu2 %v549_v25 }
  0x45   : > { %609 = vmatpush.msra.mxu3 %v594_v41 }
  0x46   : > { %514 = vmatpush.msra.mxu0 %v476_v24  ;;  %573 = vmatpush.msra.mxu2 %v548_v27 }
  0x47   : > { %610 = vmatpush.msra.mxu3 %v593_v42  ;;  %v865_v63 = vpop.eup %864 }
  0x48   : > { %515 = vmatpush.msra.mxu0 %v475_v26  ;;  %574 = vmatpush.msra.mxu2 %v547_v29  ;;  %v629_v0 = vmul.f32 %v865_v63, %v863_v62  ;;  %vm634_vm3 = vweird.f32 %v865_v63 }
  0x49   : > { %611 = vmatpush.msra.mxu3 %v592_v43  ;;  %vm635_vm4 = vmor %vm633_vm2, %vm634_vm3 }
  0x4a   : > { %516 = vmatpush.msra.mxu0 %v474_v28  ;;  %575 = vmatpush.msra.mxu2 %v546_v32  ;;  %v630_v1 = vsub.f32 1.0, %v629_v0 }
  0x4b   : > { %612 = vmatpush.msra.mxu3 %v591_v44 }
  0x4c   : > { %517 = vmatpush.msra.mxu0 %v473_v30  ;;  %576 = vmatpush.msra.mxu2 %v545_v33  ;;  %v631_v2 = vmul.f32 %v865_v63, %v630_v1 }
  0x4d   : > { %518 = vmatmul.f32.vlgmr.msra.gmra.mxu0 %v469_v31  ;;  %613 = vmatpush.msra.mxu3 %v590_v45 }
  0x4e   : > { %577 = vmatpush.msra.mxu2 %v544_v34  ;;  %v632_v4 = vadd.f32 %v865_v63, %v631_v2 }
  0x4f   : > { %614 = vmatpush.msra.mxu3 %v589_v46 }
  0x50   : > { %578 = vmatpush.msra.mxu2 %v543_v35  ;;  %v636_v8 = vsel %vm635_vm4, %v865_v63, %v632_v4 }
  0x51   : > { %615 = vmatpush.msra.mxu3 %v588_v47  ;;  %v641_v10 = vsel %vm638_vm5, %v640_v6, %v636_v8 }
  0x53   : > { %616 = vmatpush.msra.mxu3 %v587_v49 }
  0x55   : > { %617 = vmatpush.msra.mxu3 %v586_v55 }
  0x57   : > { %618 = vmatpush.msra.mxu3 %v585_v56 }
  0x59   : > { %619 = vmatpush.msra.mxu3 %v584_v57 }
  0xae   : > { %v539_v51 = vpop.f32.mrf.mxu1 }
  0xca   : > { %v519_v50 = vpop.f32.mrf.mxu0 }
  0xcb   : > { %v520_v52 = vadd.f32 %v860_v48, %v519_v50 }
  0xcd   : > { %v540_v53 = vadd.f32 %v539_v51, %v520_v52 }
  0xcf   : > { %v542_v54 = vmax.f32 %v540_v53, 0.0 }
  0xd1   : > { %579 = vmatmul.f32.vlgmr.msra.gmra.mxu2 %v542_v54 }
 0x154   : > { %v580_v59 = vpop.f32.mrf.mxu2 }
 0x155   : > { %v581_v60 = vadd.f32 %v861_v58, %v580_v59 }
 0x157   : > { %v583_v61 = vmax.f32 %v581_v60, 0.0 }
 0x159   : > { %620 = vmatmul.f32.vlgmr.msra.gmra.mxu3 %v583_v61 }
 0x1dc   : > { %v621_v9 = vpop.f32.mrf.mxu3 }
 0x1dd   : > { %v622_v11 = vadd.f32 %v862_v7, %v621_v9 }
 0x1df   : > { %v642_v12 = vmul.f32 %v641_v10, %v622_v11  ;;  %647 = vrot.lane.b32.xlu0 %v622_v11, %s973_s23 }
 0x1e1   : > { %866 = vtanh.f32 %v642_v12 }
 0x1e7   : > { %v867_v13 = vpop.eup %866 }
 0x1e8   : > { %v644_v15 = vmul.f32 %v867_v13, %v863_v62 }
 0x1ea   : > { %v655_v16 = vsub.f32 %v472_v14, %v644_v15  ;;  %v651_v17 = vsub.f32 0.0, %v644_v15 }
 0x1ec   : > { %657 = vst.msk [vmem:[%s468_s30] sm:$0xff] %vm494_vm1, %v655_v16  ;;  %v652_v18 = vmul.f32 1.442695, %v651_v17 }
 0x1ee   : > { %868 = vpow2.f32 %v652_v18 }
 0x1f4   : > { %v869_v22 = vpop.eup %868 }
 0x251   : > { %v648_v20 = vpop.permute.xlu0 %647 }
 0x252   : > { %v650_v21 = vsub.f32 %v471_v19, %v648_v20 }
 0x254   : > { %v654_v23 = vmul.f32 %v869_v22, %v650_v21 }
 0x256   : > { %656 = vst.msk [vmem:[%s464_s18] sm:$0xff] %vm494_vm1, %v654_v23 }
 0x257 PF: > { %p25_p3 = scmp.ge.s32.totalorder %s1073_s12, 4   ;;  %s1284_s19 = smov %s960_s20 }
 0x258   : > { %s1285_s20 = smov %s964_s21  ;;  %s1286_s21 = smov %s1083_s15 }
 0x259   : > { %s1287_s22 = smov %s1073_s12  ;;  %27 = sbr.rel (!%p25_p3) target bundleno = 7 (0x7), region = 122 }
 0x25e   :  { %691 = vsyncpa [#allocation4], 1 }
 0x25f   :  { %693 = vsyncpa [#allocation4 + $0x1], 1 }
 0x260   :  { %694 = vsyncpa [#allocation6], 1 }

</bundles_post_ra>
